<compile_context>
chip_gen: v7x
topology: tpu7x:2x2x1
jax: 0.10.0
libtpu: 0.0.40
codegen_flags: <defaults>
</compile_context>

<pallas_src>
import functools

import jax
import jax.numpy as jnp
from jax import lax
from jax.experimental import pallas as pl
from jax.experimental.pallas import tpu as pltpu

LANE = 128          # vreg lane width; last dim of every block
CHUNK_ROWS = 1024   # in-kernel compute chunk: bounds each elementwise temporary to 512 KiB


def _tpu_config():
    """Returns (dma_tile_rows, vmem_limit_bytes, ncores) for the local chip."""
    try:
        kind = jax.devices()[0].device_kind.lower()
    except Exception:
        kind = ""
    if "v7" in kind or "tpu7" in kind:
        # 2 TensorCores/chip, 64 MiB VMEM/TC, ~3.2 TB/s HBM.
        return 8192, 48 * 1024 * 1024, 2
    if "v6" in kind:
        # 1 TC, 128 MiB VMEM: bigger tiles amortize the ~0.35 us/grid-step overhead.
        return 8192, 64 * 1024 * 1024, 1
    # v5e / unknown: conservative tile, raised scoped-VMEM limit (default is only 16-32 MiB).
    return 4096, 64 * 1024 * 1024, 1


def _round_up(a, b):
    return ((a + b - 1) // b) * b


def _vfl_kernel(pred_ref, gt_ref, label_ref, out_ref, *,
                n_valid, tile_rows, chunk_rows, inner_tiles, group, alpha, gamma):
    c = pl.program_id(0)   # partial-sum block / TensorCore index ("parallel")
    i = pl.program_id(1)   # row-tile index within this core ("arbitrary" reduction)

    @pl.when(i == 0)
    def _init():
        out_ref[...] = jnp.zeros_like(out_ref)

    tile_idx = c * inner_tiles + i
    tile_elem0 = tile_idx * (tile_rows * LANE)   # int32; wrapper asserts no overflow
    nchunks = tile_rows // chunk_rows            # static

    def chunk_val(r0):
        x = pred_ref[pl.ds(r0, chunk_rows), :].astype(jnp.float32)     # logits
        z = gt_ref[pl.ds(r0, chunk_rows), :].astype(jnp.float32)       # gt_score (BCE target)
        lab = label_ref[pl.ds(r0, chunk_rows), :].astype(jnp.float32)  # label
        # Shared exp(-|x|) feeds both the sigmoid and the stable BCE-with-logits.
        e = jnp.exp(-jnp.abs(x))
        p = jnp.where(x >= 0.0, 1.0, e) * (1.0 / (1.0 + e))            # sigmoid(x)
        pg = p * p if gamma == 2.0 else p ** gamma
        weight = alpha * pg * (1.0 - lab) + z * lab
        bce = jnp.maximum(x, 0.0) - x * z + jnp.log1p(e)               # stable BCE, 'none'
        return bce * weight

    def accum(v):
        if group is None:
            # tiny-input fallback: single accumulator row
            out_ref[0:1, :] += v.sum(axis=0, keepdims=True)
        else:
            # `group` independent accumulation chains (pure VPU adds, layout-friendly reshape)
            out_ref[...] += v.reshape(-1, group, LANE).sum(axis=0)

    def run(masked):
        def body(j, carry):
            r0 = j * chunk_rows
            if not isinstance(r0, int):
                r0 = pl.multiple_of(r0, chunk_rows)
            v = chunk_val(r0)
            if masked:
                ids = (tile_elem0 + r0 * LANE
                       + lax.broadcasted_iota(jnp.int32, v.shape, 0) * LANE
                       + lax.broadcasted_iota(jnp.int32, v.shape, 1))
                # Select form (not multiply-by-mask): keeps NaN/Inf from garbage rows out.
                v = jnp.where(ids < n_valid, v, 0.0)
            accum(v)
            return carry

        if nchunks == 1:
            body(0, 0)
        else:
            lax.fori_loop(0, nchunks, body, 0)

    # Mask is only needed on the (single) boundary tile and on clamped duplicate tiles;
    # interior tiles take the unmasked fast path.
    tile_full = tile_elem0 + tile_rows * LANE <= n_valid

    @pl.when(tile_full)
    def _interior():
        run(masked=False)

    @pl.when(jnp.logical_not(tile_full))
    def _boundary():
        run(masked=True)


def _vfl_jnp(x, z, lab, alpha, gamma):
    """Plain-jnp VarifocalLoss sum (used for the <128-element ragged tail)."""
    x = x.astype(jnp.float32)
    z = z.astype(jnp.float32)
    lab = lab.astype(jnp.float32)
    weight = alpha * jax.nn.sigmoid(x) ** gamma * (1.0 - lab) + z * lab
    bce = jnp.maximum(x, 0.0) - x * z + jnp.log1p(jnp.exp(-jnp.abs(x)))
    return jnp.sum(bce * weight)


def varifocal_loss(pred_score, gt_score, label, alpha=0.75, gamma=2.0):
    assert pred_score.shape == gt_score.shape == label.shape
    alpha = float(alpha)
    gamma = float(gamma)

    n = int(pred_score.size)
    if n == 0:
        return jnp.float32(0.0)

    # Keep native dtypes (bf16 pred/gt, int/bf16 label are fine); the kernel upcasts in VMEM.
    pred_f = jnp.ravel(pred_score)
    gt_f = jnp.ravel(gt_score)
    lab_f = jnp.ravel(label)

    n_main = (n // LANE) * LANE
    tail = None
    if n_main < n:
        tail = _vfl_jnp(pred_f[n_main:], gt_f[n_main:], lab_f[n_main:], alpha, gamma)
    if n_main == 0:
        return tail

    def to2d(a):
        if n_main != n:
            a = a[:n_main]
        return a.reshape(-1, LANE)

    pred2d, gt2d, lab2d = to2d(pred_f), to2d(gt_f), to2d(lab_f)
    rows = pred2d.shape[0]

    cfg_tile, vmem_limit, cfg_ncores = _tpu_config()
    if rows >= CHUNK_ROWS:
        tile_rows = min(cfg_tile, _round_up(rows, CHUNK_ROWS))
        chunk_rows = CHUNK_ROWS
    else:
        tile_rows = rows
        chunk_rows = rows

    tiles = pl.cdiv(rows, tile_rows)
    ncores = cfg_ncores if tiles >= cfg_ncores else 1
    inner_tiles = pl.cdiv(tiles, ncores)

    if chunk_rows % 64 == 0:
        group = 64                      # 64 independent accumulation chains
    elif chunk_rows % 8 == 0:
        group = 8
    else:
        group = None                    # tiny-input fallback
    out_rows = group if group is not None else 8

    # Flat element ids are int32 inside the kernel.
    assert n_main + 4 * tile_rows * LANE < (1 << 31), "input too large for int32 flat indexing"

    if ncores * inner_tiles > tiles:
        def in_map(c, i):
            # Over-provisioned steps read a valid block; contribution is masked in-kernel.
            return (jnp.minimum(c * inner_tiles + i, tiles - 1), 0)
    else:
        def in_map(c, i):
            return (c * inner_tiles + i, 0)

    in_spec = pl.BlockSpec((tile_rows, LANE), in_map)
    out_spec = pl.BlockSpec((out_rows, LANE), lambda c, i: (c, 0))

    kernel = functools.partial(
        _vfl_kernel, n_valid=n_main, tile_rows=tile_rows, chunk_rows=chunk_rows,
        inner_tiles=inner_tiles, group=group, alpha=alpha, gamma=gamma)

    partials = pl.pallas_call(
        kernel,
        out_shape=jax.ShapeDtypeStruct((ncores * out_rows, LANE), jnp.float32),
        grid_spec=pltpu.PrefetchScalarGridSpec(
            num_scalar_prefetch=0,
            grid=(ncores, inner_tiles),
            in_specs=[in_spec, in_spec, in_spec],
            out_specs=out_spec,
        ),
        # NOTE: on v7x, if "parallel" does not shard the leading axis across both
        # TensorCores, switch that entry to pltpu.CORE_PARALLEL.
        compiler_params=pltpu.CompilerParams(
            dimension_semantics=("parallel", "arbitrary"),
            vmem_limit_bytes=vmem_limit,
        ),
    )(pred2d, gt2d, lab2d)

    # Single final cross-lane/sublane reduction outside the hot loop.
    loss = jnp.sum(partials)
    if tail is not None:
        loss = loss + tail
    return loss


def _reference(pred_score, gt_score, label, alpha=0.75, gamma=2.0):
    x = pred_score.astype(jnp.float32)
    z = gt_score.astype(jnp.float32)
    lab = label.astype(jnp.float32)
    weight = alpha * jax.nn.sigmoid(x) ** gamma * (1.0 - lab) + z * lab
    bce = jnp.maximum(x, 0.0) - x * z + jnp.log1p(jnp.exp(-jnp.abs(x)))
    return jnp.sum(bce * weight)


def _make_inputs(key, shape):
    k1, k2, k3 = jax.random.split(key, 3)
    pred = jax.random.normal(k1, shape, dtype=jnp.float32) * 2.0
    lab = (jax.random.uniform(k2, shape) > 0.7).astype(jnp.float32)
    gt = jax.random.uniform(k3, shape, dtype=jnp.float32) * lab
    return pred, gt, lab


if __name__ == "__main__":
    key = jax.random.PRNGKey(0)
    k_small, k_big, k_odd = jax.random.split(key, 3)

    # 1) small shapes: batch=2, anchors=8, classes=32
    pred, gt, lab = _make_inputs(k_small, (2, 8, 32))
    loss = varifocal_loss(pred, gt, lab)
    jax.block_until_ready(loss)
    ref = _reference(pred, gt, lab)
    assert jnp.allclose(loss, ref, rtol=1e-5, atol=1e-5), (loss, ref)

    # 2) multi-tile streaming reduction with a ragged (partial) last row-tile
    pred, gt, lab = _make_inputs(k_big, (2, 5000, 128))
    loss = varifocal_loss(pred, gt, lab)
    jax.block_until_ready(loss)
    ref = _reference(pred, gt, lab)
    assert jnp.allclose(loss, ref, rtol=1e-4, atol=1e-2), (loss, ref)

    # 3) non-128-divisible element count (lane-aligned prefix in kernel + jnp tail)
    pred, gt, lab = _make_inputs(k_odd, (2, 7, 33))
    loss = varifocal_loss(pred, gt, lab)
    jax.block_until_ready(loss)
    ref = _reference(pred, gt, lab)
    assert jnp.allclose(loss, ref, rtol=1e-5, atol=1e-5), (loss, ref)

    print("KERNEL_OK")
</pallas_src>

<mosaic_0001>
module attributes {stable_mosaic.version = 11 : i64} {
  func.func @_vfl_kernel(%arg0: i32, %arg1: i32, %arg2: memref<4x128xf32, #tpu.memory_space<vmem>>, %arg3: memref<4x128xf32, #tpu.memory_space<vmem>>, %arg4: memref<4x128xf32, #tpu.memory_space<vmem>>, %arg5: memref<8x128xf32, #tpu.memory_space<vmem>>) attributes {dimension_semantics = [#tpu.dimension_semantics<parallel>, #tpu.dimension_semantics<arbitrary>], iteration_bounds = array<i64: 1, 1>, scalar_prefetch = 0 : i64, scratch_operands = 0 : i64, tpu.core_type = #tpu.core_type<tc>, window_params = [{transform_indices = @transform_0, window_bounds = array<i64: 4, 128>}, {transform_indices = @transform_1, window_bounds = array<i64: 4, 128>}, {transform_indices = @transform_2, window_bounds = array<i64: 4, 128>}, {transform_indices = @transform_3, window_bounds = array<i64: 8, 128>}]} {
    %c0_i32 = arith.constant 0 : i32
    %0 = arith.cmpi eq, %arg1, %c0_i32 : i32
    %1 = arith.extui %0 : i1 to i32
    %c0_i32_0 = arith.constant 0 : i32
    %2 = arith.cmpi ne, %1, %c0_i32_0 : i32
    scf.if %2 {
      %cst = arith.constant 0.000000e+00 : f32
      %13 = vector.broadcast %cst : f32 to vector<8x128xf32>
      %c0 = arith.constant 0 : index
      %c0_5 = arith.constant 0 : index
      %14 = vector.load %arg5[%c0, %c0_5] : memref<8x128xf32, #tpu.memory_space<vmem>>, vector<8x128xf32>
      tpu.vector_store %arg5[%c0, %c0_5], %13 {strides = array<i32>} : memref<8x128xf32, #tpu.memory_space<vmem>>, vector<8x128xf32>,
    } else {
    }
    %c1_i32 = arith.constant 1 : i32
    %3 = arith.muli %arg0, %c1_i32 : i32
    %4 = arith.addi %3, %arg1 : i32
    %c512_i32 = arith.constant 512 : i32
    %5 = arith.muli %4, %c512_i32 : i32
    %c512_i32_1 = arith.constant 512 : i32
    %6 = arith.addi %5, %c512_i32_1 : i32
    %c512_i32_2 = arith.constant 512 : i32
    %7 = arith.cmpi sle, %6, %c512_i32_2 : i32
    %8 = arith.extui %7 : i1 to i32
    %c0_i32_3 = arith.constant 0 : i32
    %9 = arith.cmpi ne, %8, %c0_i32_3 : i32
    scf.if %9 {
      %c0 = arith.constant 0 : index
      %c0_5 = arith.constant 0 : index
      %13 = vector.load %arg2[%c0, %c0_5] : memref<4x128xf32, #tpu.memory_space<vmem>>, vector<4x128xf32>
      %c0_6 = arith.constant 0 : index
      %c0_7 = arith.constant 0 : index
      %14 = vector.load %arg3[%c0_6, %c0_7] : memref<4x128xf32, #tpu.memory_space<vmem>>, vector<4x128xf32>
      %c0_8 = arith.constant 0 : index
      %c0_9 = arith.constant 0 : index
      %15 = vector.load %arg4[%c0_8, %c0_9] : memref<4x128xf32, #tpu.memory_space<vmem>>, vector<4x128xf32>
      %16 = math.absf %13 : vector<4x128xf32>
      %cst = arith.constant 0.000000e+00 : f32
      %17 = vector.broadcast %cst : f32 to vector<4x128xf32>
      %18 = arith.subf %17, %16 : vector<4x128xf32>
      %19 = math.exp %18 : vector<4x128xf32>
      %cst_10 = arith.constant 0.000000e+00 : f32
      %20 = vector.broadcast %cst_10 : f32 to vector<4x128xf32>
      %21 = arith.cmpf oge, %13, %20 : vector<4x128xf32>
      %cst_11 = arith.constant 1.000000e+00 : f32
      %22 = vector.broadcast %cst_11 : f32 to vector<4x128xf32>
      %23 = arith.select %21, %22, %19 : vector<4x128xi1>, vector<4x128xf32>
      %cst_12 = arith.constant 1.000000e+00 : f32
      %24 = vector.broadcast %cst_12 : f32 to vector<4x128xf32>
      %25 = arith.addf %24, %19 : vector<4x128xf32>
      %cst_13 = arith.constant 1.000000e+00 : f32
      %26 = vector.broadcast %cst_13 : f32 to vector<4x128xf32>
      %27 = arith.divf %26, %25 : vector<4x128xf32>
      %28 = arith.mulf %23, %27 : vector<4x128xf32>
      %29 = arith.mulf %28, %28 : vector<4x128xf32>
      %cst_14 = arith.constant 7.500000e-01 : f32
      %30 = vector.broadcast %cst_14 : f32 to vector<4x128xf32>
      %31 = arith.mulf %30, %29 : vector<4x128xf32>
      %cst_15 = arith.constant 1.000000e+00 : f32
      %32 = vector.broadcast %cst_15 : f32 to vector<4x128xf32>
      %33 = arith.subf %32, %15 : vector<4x128xf32>
      %34 = arith.mulf %31, %33 : vector<4x128xf32>
      %35 = arith.mulf %14, %15 : vector<4x128xf32>
      %36 = arith.addf %34, %35 : vector<4x128xf32>
      %cst_16 = arith.constant 0.000000e+00 : f32
      %37 = vector.broadcast %cst_16 : f32 to vector<4x128xf32>
      %38 = arith.maximumf %13, %37 : vector<4x128xf32>
      %39 = arith.mulf %13, %14 : vector<4x128xf32>
      %40 = arith.subf %38, %39 : vector<4x128xf32>
      %41 = math.log1p %19 : vector<4x128xf32>
      %42 = arith.addf %40, %41 : vector<4x128xf32>
      %43 = arith.mulf %42, %36 : vector<4x128xf32>
      %c0_17 = arith.constant 0 : index
      %c0_18 = arith.constant 0 : index
      %44 = vector.load %arg5[%c0_17, %c0_18] : memref<8x128xf32, #tpu.memory_space<vmem>>, vector<1x128xf32>
      %cst_19 = arith.constant dense<0.000000e+00> : vector<128xf32>
      %45 = vector.multi_reduction <add>, %43, %cst_19 [0] : vector<4x128xf32> to vector<128xf32>
      %46 = vector.shape_cast %45 : vector<128xf32> to vector<1x128xf32>
      %47 = arith.addf %44, %46 : vector<1x128xf32>
      %c0_20 = arith.constant 0 : index
      %c0_21 = arith.constant 0 : index
      %48 = vector.load %arg5[%c0_20, %c0_21] : memref<8x128xf32, #tpu.memory_space<vmem>>, vector<1x128xf32>
      tpu.vector_store %arg5[%c0_20, %c0_21], %47 {strides = array<i32>} : memref<8x128xf32, #tpu.memory_space<vmem>>, vector<1x128xf32>,
    } else {
    }
    %true = arith.constant true
    %10 = arith.xori %7, %true : i1
    %11 = arith.extui %10 : i1 to i32
    %c0_i32_4 = arith.constant 0 : i32
    %12 = arith.cmpi ne, %11, %c0_i32_4 : i32
    scf.if %12 {
      %c0 = arith.constant 0 : index
      %c0_5 = arith.constant 0 : index
      %13 = vector.load %arg2[%c0, %c0_5] : memref<4x128xf32, #tpu.memory_space<vmem>>, vector<4x128xf32>
      %c0_6 = arith.constant 0 : index
      %c0_7 = arith.constant 0 : index
      %14 = vector.load %arg3[%c0_6, %c0_7] : memref<4x128xf32, #tpu.memory_space<vmem>>, vector<4x128xf32>
      %c0_8 = arith.constant 0 : index
      %c0_9 = arith.constant 0 : index
      %15 = vector.load %arg4[%c0_8, %c0_9] : memref<4x128xf32, #tpu.memory_space<vmem>>, vector<4x128xf32>
      %16 = math.absf %13 : vector<4x128xf32>
      %cst = arith.constant 0.000000e+00 : f32
      %17 = vector.broadcast %cst : f32 to vector<4x128xf32>
      %18 = arith.subf %17, %16 : vector<4x128xf32>
      %19 = math.exp %18 : vector<4x128xf32>
      %cst_10 = arith.constant 0.000000e+00 : f32
      %20 = vector.broadcast %cst_10 : f32 to vector<4x128xf32>
      %21 = arith.cmpf oge, %13, %20 : vector<4x128xf32>
      %cst_11 = arith.constant 1.000000e+00 : f32
      %22 = vector.broadcast %cst_11 : f32 to vector<4x128xf32>
      %23 = arith.select %21, %22, %19 : vector<4x128xi1>, vector<4x128xf32>
      %cst_12 = arith.constant 1.000000e+00 : f32
      %24 = vector.broadcast %cst_12 : f32 to vector<4x128xf32>
      %25 = arith.addf %24, %19 : vector<4x128xf32>
      %cst_13 = arith.constant 1.000000e+00 : f32
      %26 = vector.broadcast %cst_13 : f32 to vector<4x128xf32>
      %27 = arith.divf %26, %25 : vector<4x128xf32>
      %28 = arith.mulf %23, %27 : vector<4x128xf32>
      %29 = arith.mulf %28, %28 : vector<4x128xf32>
      %cst_14 = arith.constant 7.500000e-01 : f32
      %30 = vector.broadcast %cst_14 : f32 to vector<4x128xf32>
      %31 = arith.mulf %30, %29 : vector<4x128xf32>
      %cst_15 = arith.constant 1.000000e+00 : f32
      %32 = vector.broadcast %cst_15 : f32 to vector<4x128xf32>
      %33 = arith.subf %32, %15 : vector<4x128xf32>
      %34 = arith.mulf %31, %33 : vector<4x128xf32>
      %35 = arith.mulf %14, %15 : vector<4x128xf32>
      %36 = arith.addf %34, %35 : vector<4x128xf32>
      %cst_16 = arith.constant 0.000000e+00 : f32
      %37 = vector.broadcast %cst_16 : f32 to vector<4x128xf32>
      %38 = arith.maximumf %13, %37 : vector<4x128xf32>
      %39 = arith.mulf %13, %14 : vector<4x128xf32>
      %40 = arith.subf %38, %39 : vector<4x128xf32>
      %41 = math.log1p %19 : vector<4x128xf32>
      %42 = arith.addf %40, %41 : vector<4x128xf32>
      %43 = arith.mulf %42, %36 : vector<4x128xf32>
      %c0_i32_17 = arith.constant 0 : i32
      %44 = arith.addi %5, %c0_i32_17 : i32
      %45 = tpu.iota {dimensions = array<i32: 0>} : vector<4x128xi32>
      %c128_i32 = arith.constant 128 : i32
      %46 = vector.broadcast %c128_i32 : i32 to vector<4x128xi32>
      %47 = arith.muli %45, %46 : vector<4x128xi32>
      %48 = vector.broadcast %44 : i32 to vector<4x128xi32>
      %49 = arith.addi %48, %47 : vector<4x128xi32>
      %50 = tpu.iota {dimensions = array<i32: 1>} : vector<4x128xi32>
      %51 = arith.addi %49, %50 : vector<4x128xi32>
      %c512_i32_18 = arith.constant 512 : i32
      %52 = vector.broadcast %c512_i32_18 : i32 to vector<4x128xi32>
      %53 = arith.cmpi slt, %51, %52 : vector<4x128xi32>
      %cst_19 = arith.constant 0.000000e+00 : f32
      %54 = vector.broadcast %cst_19 : f32 to vector<4x128xf32>
      %55 = arith.select %53, %43, %54 : vector<4x128xi1>, vector<4x128xf32>
      %c0_20 = arith.constant 0 : index
      %c0_21 = arith.constant 0 : index
      %56 = vector.load %arg5[%c0_20, %c0_21] : memref<8x128xf32, #tpu.memory_space<vmem>>, vector<1x128xf32>
      %cst_22 = arith.constant dense<0.000000e+00> : vector<128xf32>
      %57 = vector.multi_reduction <add>, %55, %cst_22 [0] : vector<4x128xf32> to vector<128xf32>
      %58 = vector.shape_cast %57 : vector<128xf32> to vector<1x128xf32>
      %59 = arith.addf %56, %58 : vector<1x128xf32>
      %c0_23 = arith.constant 0 : index
      %c0_24 = arith.constant 0 : index
      %60 = vector.load %arg5[%c0_23, %c0_24] : memref<8x128xf32, #tpu.memory_space<vmem>>, vector<1x128xf32>
      tpu.vector_store %arg5[%c0_23, %c0_24], %59 {strides = array<i32>} : memref<8x128xf32, #tpu.memory_space<vmem>>, vector<1x128xf32>,
    } else {
    }
    return
  }
  func.func @transform_0(%arg0: i32, %arg1: i32) -> (i32, i32) {
    %c1_i32 = arith.constant 1 : i32
    %0 = arith.muli %arg0, %c1_i32 : i32
    %1 = arith.addi %0, %arg1 : i32
    %c0_i32 = arith.constant 0 : i32
    %c0_i32_0 = arith.constant 0 : i32
    return %1, %c0_i32 : i32, i32
  }
  func.func @transform_1(%arg0: i32, %arg1: i32) -> (i32, i32) {
    %c1_i32 = arith.constant 1 : i32
    %0 = arith.muli %arg0, %c1_i32 : i32
    %1 = arith.addi %0, %arg1 : i32
    %c0_i32 = arith.constant 0 : i32
    %c0_i32_0 = arith.constant 0 : i32
    return %1, %c0_i32 : i32, i32
  }
  func.func @transform_2(%arg0: i32, %arg1: i32) -> (i32, i32) {
    %c1_i32 = arith.constant 1 : i32
    %0 = arith.muli %arg0, %c1_i32 : i32
    %1 = arith.addi %0, %arg1 : i32
    %c0_i32 = arith.constant 0 : i32
    %c0_i32_0 = arith.constant 0 : i32
    return %1, %c0_i32 : i32, i32
  }
  func.func @transform_3(%arg0: i32, %arg1: i32) -> (i32, i32) {
    %c0_i32 = arith.constant 0 : i32
    %c0_i32_0 = arith.constant 0 : i32
    return %arg0, %c0_i32 : i32, i32
  }
}

</mosaic_0001>

<bundles_post_ra>
// kernel: tpu_custom_call.1
= control target key start
LH: loop header
LB: loop body
LE: loop exit
PB: predicated region body
PF: predicated region fallthrough
CT: control target
= control target key end

     0   :  { %8 = vsyncpa [#allocation3], 0  ;;  %s370_s0 = inlined_call_operand.hbm [shape: f32[4,128], index: 0, kind: input, shape index: {}]   ;;  %s371_s1 = inlined_call_operand.hbm [shape: f32[4,128], index: 1, kind: input, shape index: {}]   ;;  %s372_s2 = inlined_call_operand.hbm [shape: f32[4,128], index: 2, kind: input, shape index: {}]   ;;  %s373_s3 = inlined_call_operand.hbm [shape: f32[8,128], index: 3, kind: output, shape index: {}]  }
   0x1   :  { %9 = vsyncpa [#allocation6], 0 }
   0x2   :  { %10 = vsyncpa [#allocation4], 0  ;;  %s297_s12 = smov [#allocation5]   ;;  %s298_s14 = smov [#allocation2]  }
   0x3   :  { %s33_s13 = sshll.u32 %s297_s12, 4  ;;  %s20_s15 = sshll.u32 %s298_s14, 4  ;;  %s34_s13 = int_to_ptr.vmem [resolvable:$true] %s33_s13  ;;  %s21_s15 = int_to_ptr.vmem [resolvable:$true] %s20_s15 }
   0x4   :  { %s203_s18 = scalar_lea.hbm %s371_s1, 64 }
   0x5   :  { %p204_p0 = scmp.ne.s32.totalorder %s371_s1, %s203_s18  ;;  %p207_p1 = scmp.lt.u32.totalorder %s203_s18, %s371_s1 }
   0x7   :  { %p209_p2 = pnand %p207_p1, %p204_p0 }
   0x9   :  { %212 = shalt.err (!%p209_p2)
}
   0xa   :  { %s213_s23 = scalar_lea.vmem %s34_s13, 64  ;;  %p218_p4 = scmp.lt.s32.totalorder %s34_s13, %s34_s13 }
   0xb   :  { %p214_p3 = scmp.ne.s32.totalorder %s34_s13, %s213_s23  ;;  %p219_p5 = scmp.lt.s32.totalorder %s213_s23, %s213_s23 }
   0xd   :  { %p220_p6 = por %p219_p5, %p218_p4 }
   0xf   :  { %p221_p7 = pnand %p220_p6, %p214_p3 }
  0x11   :  { %224 = shalt.err (!%p221_p7)
}
  0x12   :  { %36 = dma.hbm_to_vmem [thread:$0]  %s371_s1, 64, %s34_s13, [#allocation6]  }
  0x13   :  { %s225_s28 = scalar_lea.hbm %s370_s0, 64 }
  0x14   :  { %p226_p8 = scmp.ne.s32.totalorder %s370_s0, %s225_s28  ;;  %p229_p9 = scmp.lt.u32.totalorder %s225_s28, %s370_s0 }
  0x16   :  { %p231_p10 = pnand %p229_p9, %p226_p8 }
  0x18   :  { %234 = shalt.err (!%p231_p10)
}
  0x19   :  { %s235_s6 = scalar_lea.vmem %s21_s15, 64  ;;  %p240_p12 = scmp.lt.s32.totalorder %s21_s15, %s21_s15 }
  0x1a   :  { %p236_p11 = scmp.ne.s32.totalorder %s21_s15, %s235_s6  ;;  %p241_p13 = scmp.lt.s32.totalorder %s235_s6, %s235_s6 }
  0x1c   :  { %p242_p0 = por %p241_p13, %p240_p12 }
  0x1e   :  { %p243_p1 = pnand %p242_p0, %p236_p11 }
  0x20   :  { %246 = shalt.err (!%p243_p1)
}
  0x21   :  { %23 = dma.hbm_to_vmem [thread:$0]  %s370_s0, 64, %s21_s15, [#allocation3]  }
  0x22   :  { %s299_s8 = smov [#allocation7]   ;;  %s247_s12 = scalar_lea.hbm %s372_s2, 64 }
  0x23   :  { %s46_s9 = sshll.u32 %s299_s8, 4  ;;  %p248_p2 = scmp.ne.s32.totalorder %s372_s2, %s247_s12  ;;  %s47_s9 = int_to_ptr.vmem [resolvable:$true] %s46_s9 }
  0x24   :  { %p251_p3 = scmp.lt.u32.totalorder %s247_s12, %s372_s2 }
  0x26   :  { %p253_p4 = pnand %p251_p3, %p248_p2 }
  0x28   :  { %256 = shalt.err (!%p253_p4)
}
  0x29   :  { %s257_s18 = scalar_lea.vmem %s47_s9, 64  ;;  %p262_p6 = scmp.lt.s32.totalorder %s47_s9, %s47_s9 }
  0x2a   :  { %p258_p5 = scmp.ne.s32.totalorder %s47_s9, %s257_s18  ;;  %p263_p7 = scmp.lt.s32.totalorder %s257_s18, %s257_s18 }
  0x2c   :  { %p264_p8 = por %p263_p7, %p262_p6 }
  0x2e   :  { %p265_p9 = pnand %p264_p8, %p258_p5 }
  0x30   :  { %268 = shalt.err (!%p265_p9)
}
  0x31   :  { %49 = dma.hbm_to_vmem [thread:$0]  %s372_s2, 64, %s47_s9, [#allocation6]  }
  0x32   :  { %291 = dma.done.wait [#allocation3], 64  }
  0x33   :  { %292 = vsyncadd [#allocation3], 4294967232 }
  0x34   :  { %293 = dma.done.wait [#allocation6], 128  }
  0x35   :  { %294 = vsyncadd [#allocation6], 4294967168  ;;  %v300_v0 = vmov 0.0   ;;  %v74_v1 = vld [vmem:[#allocation2] sm:$0xf]  ;;  %vm108_vm2 = vcmask 1043456  }
  0x36   :  { %66 = vst [vmem:[#allocation8] sm:$0xff] %v300_v0  ;;  %v77_v2 = vand.u32 2147483647, %v74_v1  ;;  %vm81_vm0 = vcmp.ge.f32.partialorder %v74_v1, 0.0  ;;  %v75_v8 = vld [vmem:[#allocation5] sm:$0xf] }
  0x37   :  { %v93_v12 = vmax.f32 %v74_v1, 0.0  ;;  %v94_v13 = vmul.f32 %v75_v8, %v74_v1  ;;  %v76_v15 = vld [vmem:[#allocation7] sm:$0xf]  ;;  %s301_s2 = smov [#allocation8]  }
  0x38   :  { %v78_v3 = vsub.f32 0.0, %v77_v2  ;;  %v89_v21 = vsub.f32 1.0, %v76_v15  ;;  %v91_v25 = vmul.f32 %v76_v15, %v75_v8  ;;  %s182_s19 = sshll.u32 %s301_s2, 4  ;;  %s183_s19 = int_to_ptr.vmem [resolvable:$true] %s182_s19 }
  0x39   :  { %v95_v22 = vsub.f32 %v93_v12, %v94_v13  ;;  %s269_s20 = scalar_lea.vmem %s183_s19, 128  ;;  %p274_p11 = scmp.lt.s32.totalorder %s183_s19, %s183_s19 }
  0x3a   :  { %v79_v4 = vmul.f32 1.442695, %v78_v3  ;;  %p270_p10 = scmp.ne.s32.totalorder %s183_s19, %s269_s20  ;;  %p275_p12 = scmp.lt.s32.totalorder %s269_s20, %s269_s20 }
  0x3c   :  { %197 = vpow2.f32 %v79_v4  ;;  %p276_p13 = por %p275_p12, %p274_p11 }
  0x3d   :  { %v107_v36 = vld [vmem:[#allocation8] sm:$0x1] }
  0x3e   :  { %p277_p0 = pnand %p276_p13, %p270_p10 }
  0x46   :  { %v198_v5 = vpop.eup %197 }
  0x47   :  { %v83_v6 = vadd.f32 1.0, %v198_v5  ;;  %v99_v7 = vmul.f32 -0.5, %v198_v5  ;;  %v102_v10 = vand.u32 2147483647, %v198_v5  ;;  %v82_v11 = vsel %vm81_vm0, 1.0, %v198_v5 }
  0x49   :  { %199 = vrcp.f32 %v83_v6  ;;  %v100_v9 = vadd.f32 1.0, %v99_v7  ;;  %vm103_vm1 = vcmp.lt.f32.partialorder %v102_v10, 0.0004427343 }
  0x4a   :  { %201 = vlog2.f32 %v83_v6 }
  0x4b   :  { %v101_v16 = vmul.f32 %v198_v5, %v100_v9 }
  0x53   :  { %v200_v14 = vpop.eup %199 }
  0x54   :  { %v202_v17 = vpop.eup %201  ;;  %v86_v18 = vmul.f32 %v200_v14, %v82_v11 }
  0x55   :  { %v98_v19 = vmul.f32 0.6931472, %v202_v17 }
  0x56   :  { %v87_v20 = vmul.f32 %v86_v18, %v86_v18 }
  0x57   :  { %v104_v23 = vsel %vm103_vm1, %v101_v16, %v98_v19 }
  0x58   :  { %v88_v24 = vmul.f32 0.75, %v87_v20  ;;  %v105_v27 = vadd.f32 %v104_v23, %v95_v22 }
  0x5a   :  { %v90_v26 = vmul.f32 %v89_v21, %v88_v24 }
  0x5c   :  { %v92_v28 = vadd.f32 %v91_v25, %v90_v26 }
  0x5e   :  { %v106_v29 = vmul.f32 %v105_v27, %v92_v28 }
  0x60   :  { %v109_v30 = vsel %vm108_vm2, %v106_v29, 0.0 }
  0x61   :  { %v110_v31 = vrot.slane %v109_v30, 4 }
  0x63   :  { %v111_v32 = vadd.f32 %v110_v31, %v109_v30 }
  0x65   :  { %v112_v33 = vrot.slane %v111_v32, 2 }
  0x67   :  { %v113_v34 = vadd.f32 %v112_v33, %v111_v32 }
  0x69   :  { %v114_v35 = vrot.slane %v113_v34, 1 }
  0x6b   :  { %v115_v37 = vadd.f32 %v114_v35, %v113_v34 }
  0x6d   :  { %v116_v38 = vadd.f32 %v115_v37, %v107_v36 }
  0x6f   :  { %117 = vst [vmem:[#allocation8] sm:$0x1] %v116_v38 }
  0x70   :  { %280 = shalt.err (!%p277_p0)
}
  0x71   :  { %s281_s23 = scalar_lea.hbm %s373_s3, 128 }
  0x72   :  { %p282_p1 = scmp.ne.s32.totalorder %s373_s3, %s281_s23  ;;  %p285_p2 = scmp.lt.u32.totalorder %s281_s23, %s373_s3 }
  0x74   :  { %p287_p3 = pnand %p285_p2, %p282_p1 }
  0x76   :  { %290 = shalt.err (!%p287_p3)
}
  0x77   :  { %185 = dma.vmem_to_hbm [thread:$0]  %s183_s19, 128, %s373_s3, [#allocation4]  }
  0x78   :  { %295 = dma.done.wait [#allocation4], 128  }
  0x79   :  { %296 = vsyncadd [#allocation4], 4294967168 }
  0x7a   :  { %189 = vsyncpa [#allocation3], 1 }
  0x7b   :  { %190 = vsyncpa [#allocation6], 1 }
  0x7c   :  { %191 = vsyncpa [#allocation4], 1 }

</bundles_post_ra>
